<compile_context>
chip_gen: v6e
topology: v6e:2x2x1
jax: 0.10.0
libtpu: 0.0.40
codegen_flags: <defaults>
</compile_context>

<pallas_src>
import jax
import jax.numpy as jnp
from jax.experimental import pallas as pl
from jax.experimental.pallas import tpu as pltpu

_LANE = 128
_TARGET_BLOCK_BYTES = 2 * 1024 * 1024  # ~2 MiB streamed block per grid step


def _reflect_kernel(x_ref, s_ref, o_ref):
    # x_ref: (tile_b, tile_fr, Fc); s_ref: (tile_fr, Fc) broadcasts over batch.
    o_ref[...] = x_ref[...] * s_ref[...]


def _pick_lane_width(f_pad):
    """Largest lane width (multiple of 128) dividing f_pad that still leaves >= 8 rows."""
    cands = [c for c in (1024, 512, 256, 128) if f_pad % c == 0]
    for c in cands:
        if f_pad // c >= 8:
            return c
    return cands[0]  # feature dim too small for 8 rows; just be lane-dense


def global_reflection(x, signs, *, donate_input=False):
    """x: (B, ...) array; signs: (prod(x.shape[1:]),) of +/-1. Returns x * signs."""
    orig_shape = x.shape
    B = x.shape[0]
    F = 1
    for d in x.shape[1:]:
        F *= d
    assert signs.shape == (F,), f"signs must have shape ({F},), got {signs.shape}"

    x_flat = x.reshape(B, F)
    s_flat = signs.astype(x.dtype)

    # Pad the feature axis to a lane multiple so blocks are always (., 128k).
    f_pad = pl.cdiv(F, _LANE) * _LANE
    if f_pad != F:
        x_flat = jnp.pad(x_flat, ((0, 0), (0, f_pad - F)))
        s_flat = jnp.pad(s_flat, (0, f_pad - F), constant_values=1)

    # Fold features into a sublane-dense (Fr, Fc) slab.
    fc = _pick_lane_width(f_pad)
    fr = f_pad // fc
    x3 = x_flat.reshape(B, fr, fc)
    s2 = s_flat.reshape(fr, fc)

    # Pick the largest block that stays near the per-step byte target so the
    # double-buffered pipeline issues few, large DMAs.
    bytes_per_elem = x.dtype.itemsize
    target_elems = max(_TARGET_BLOCK_BYTES // bytes_per_elem, fc)

    row_cap = max(8, target_elems // fc)
    # Block's second-to-last dim must be a multiple of 8 or the full dim.
    tile_fr = fr if fr <= row_cap else (row_cap // 8) * 8
    b_cap = max(1, target_elems // (tile_fr * fc))
    tile_b = B if B <= b_cap else b_cap

    nf = pl.cdiv(fr, tile_fr)
    nb = pl.cdiv(B, tile_b)

    kwargs = {}
    if donate_input:
        # Callers that don't need x afterwards can halve peak HBM allocation.
        kwargs["input_output_aliases"] = {0: 0}

    out3 = pl.pallas_call(
        _reflect_kernel,
        out_shape=jax.ShapeDtypeStruct((B, fr, fc), x.dtype),
        grid=(nf, nb),
        in_specs=[
            pl.BlockSpec((tile_b, tile_fr, fc), lambda fi, bi: (bi, fi, 0)),
            # Constant block index along the inner (batch) axis: Pallas skips the
            # re-DMA, so the signs block stays resident in VMEM across the batch.
            pl.BlockSpec((tile_fr, fc), lambda fi, bi: (fi, 0)),
        ],
        out_specs=pl.BlockSpec((tile_b, tile_fr, fc), lambda fi, bi: (bi, fi, 0)),
        compiler_params=pltpu.CompilerParams(
            dimension_semantics=("parallel", "parallel"),
            vmem_limit_bytes=32 * 1024 * 1024,
        ),
        **kwargs,
    )(x3, s2)

    out_flat = out3.reshape(B, f_pad)
    if f_pad != F:
        out_flat = out_flat[:, :F]
    return out_flat.reshape(orig_shape)


if __name__ == "__main__":
    B, C, H, W = 2, 4, 16, 16
    in_features = C * H * W

    key = jax.random.PRNGKey(0)
    kx, ks = jax.random.split(key)

    x = jax.random.normal(kx, (B, C, H, W), dtype=jnp.float32)

    # Deterministic +/-1 signs (mirrors np.random.randint(0, 2, F) * 2 - 1).
    signs = (
        jax.random.randint(ks, (in_features,), 0, 2, dtype=jnp.int32) * 2 - 1
    ).astype(jnp.float32)

    out = global_reflection(x, signs)
    out = jax.block_until_ready(out)

    # Reference check in plain JAX.
    ref = (x.reshape(B, -1) * signs.reshape(-1)).reshape(x.shape)
    assert out.shape == x.shape
    assert out.dtype == x.dtype
    assert jnp.allclose(out, ref), "mismatch vs reference"

    print("KERNEL_OK")
</pallas_src>

<mosaic_0001>
module attributes {stable_mosaic.version = 11 : i64} {
  func.func @_reflect_kernel(%arg0: i32, %arg1: i32, %arg2: memref<2x8x128xf32, #tpu.memory_space<vmem>>, %arg3: memref<8x128xf32, #tpu.memory_space<vmem>>, %arg4: memref<2x8x128xf32, #tpu.memory_space<vmem>>) attributes {dimension_semantics = [#tpu.dimension_semantics<parallel>, #tpu.dimension_semantics<parallel>], iteration_bounds = array<i64: 1, 1>, scalar_prefetch = 0 : i64, scratch_operands = 0 : i64, tpu.core_type = #tpu.core_type<tc>, window_params = [{transform_indices = @transform_0, window_bounds = array<i64: 2, 8, 128>}, {transform_indices = @transform_1, window_bounds = array<i64: 8, 128>}, {transform_indices = @transform_2, window_bounds = array<i64: 2, 8, 128>}]} {
    %c0 = arith.constant 0 : index
    %c0_0 = arith.constant 0 : index
    %c0_1 = arith.constant 0 : index
    %0 = vector.load %arg2[%c0, %c0_0, %c0_1] : memref<2x8x128xf32, #tpu.memory_space<vmem>>, vector<2x8x128xf32>
    %c0_2 = arith.constant 0 : index
    %c0_3 = arith.constant 0 : index
    %1 = vector.load %arg3[%c0_2, %c0_3] : memref<8x128xf32, #tpu.memory_space<vmem>>, vector<8x128xf32>
    %2 = vector.shape_cast %1 : vector<8x128xf32> to vector<1x8x128xf32>
    %3 = vector.broadcast %2 : vector<1x8x128xf32> to vector<2x8x128xf32>
    %4 = arith.mulf %0, %3 : vector<2x8x128xf32>
    %c0_4 = arith.constant 0 : index
    %c0_5 = arith.constant 0 : index
    %c0_6 = arith.constant 0 : index
    %5 = vector.load %arg4[%c0_4, %c0_5, %c0_6] : memref<2x8x128xf32, #tpu.memory_space<vmem>>, vector<2x8x128xf32>
    tpu.vector_store %arg4[%c0_4, %c0_5, %c0_6], %4 {strides = array<i32>} : memref<2x8x128xf32, #tpu.memory_space<vmem>>, vector<2x8x128xf32>,
    return
  }
  func.func @transform_0(%arg0: i32, %arg1: i32) -> (i32, i32, i32) {
    %c0_i32 = arith.constant 0 : i32
    %c0_i32_0 = arith.constant 0 : i32
    return %arg1, %arg0, %c0_i32 : i32, i32, i32
  }
  func.func @transform_1(%arg0: i32, %arg1: i32) -> (i32, i32) {
    %c0_i32 = arith.constant 0 : i32
    %c0_i32_0 = arith.constant 0 : i32
    return %arg0, %c0_i32 : i32, i32
  }
  func.func @transform_2(%arg0: i32, %arg1: i32) -> (i32, i32, i32) {
    %c0_i32 = arith.constant 0 : i32
    %c0_i32_0 = arith.constant 0 : i32
    return %arg1, %arg0, %c0_i32 : i32, i32, i32
  }
}

</mosaic_0001>

<bundles_post_ra>
// kernel: tpu_custom_call.1
= control target key start
LH: loop header
LB: loop body
LE: loop exit
PB: predicated region body
PF: predicated region fallthrough
CT: control target
= control target key end

     0   :  { %7 = vsyncpa [#allocation3], 0  ;;  %s169_s0 = inlined_call_operand.hbm [shape: f32[2,8,128], index: 0, kind: input, shape index: {}]   ;;  %s170_s1 = inlined_call_operand.hbm [shape: f32[8,128], index: 1, kind: input, shape index: {}]   ;;  %s171_s2 = inlined_call_operand.hbm [shape: f32[2,8,128], index: 2, kind: output, shape index: {}]  }
   0x1   :  { %8 = vsyncpa [#allocation6], 0 }
   0x2   :  { %9 = vsyncpa [#allocation4], 0  ;;  %s134_s9 = smov [#allocation2]  }
   0x3   :  { %s15_s10 = sshll.u32 %s134_s9, 4  ;;  %s16_s10 = int_to_ptr.vmem [resolvable:$true] %s15_s10 }
   0x4   :  { %s76_s11 = scalar_lea.vmem %s16_s10, 256  ;;  %p81_p1 = scmp.lt.s32.totalorder %s16_s10, %s16_s10 }
   0x5   :  { %p77_p0 = scmp.ne.s32.totalorder %s16_s10, %s76_s11  ;;  %p82_p2 = scmp.lt.s32.totalorder %s76_s11, %s76_s11 }
   0x7   :  { %p83_p3 = por %p82_p2, %p81_p1 }
   0x9   :  { %p84_p4 = pnand %p83_p3, %p77_p0 }
   0xb   :  { %87 = shalt.err (!%p84_p4)
}
   0xc   :  { %s135_s12 = smov 128   ;;  %s136_s13 = smov 8  }
   0xd   :  { %21 = dma.hbm_to_vmem [thread:$0]  %s169_s0, 256, %s16_s10, [#allocation3], %s135_s12, %s135_s12, %s136_s13  }
   0xe   :  { %s137_s16 = smov [#allocation5]  }
   0xf   :  { %s28_s17 = sshll.u32 %s137_s16, 4  ;;  %s29_s17 = int_to_ptr.vmem [resolvable:$true] %s28_s17 }
  0x10   :  { %s96_s18 = scalar_lea.vmem %s29_s17, 128  ;;  %p101_p6 = scmp.lt.s32.totalorder %s29_s17, %s29_s17 }
  0x11   :  { %p97_p5 = scmp.ne.s32.totalorder %s29_s17, %s96_s18  ;;  %p102_p7 = scmp.lt.s32.totalorder %s96_s18, %s96_s18 }
  0x13   :  { %p103_p8 = por %p102_p7, %p101_p6 }
  0x15   :  { %p104_p9 = pnand %p103_p8, %p97_p5 }
  0x17   :  { %107 = shalt.err (!%p104_p9)
}
  0x18   :  { %31 = dma.hbm_to_vmem [thread:$0]  %s170_s1, 128, %s29_s17, [#allocation6]  }
  0x19   :  { %128 = dma.done.wait [#allocation3], 256  }
  0x1a   :  { %129 = vsyncadd [#allocation3], 4294967040 }
  0x1b   :  { %130 = dma.done.wait [#allocation6], 128  }
  0x1c   :  { %131 = vsyncadd [#allocation6], 4294967168  ;;  %s138_s21 = smov [#allocation7]   ;;  %v38_v0 = vld [vmem:[#allocation2] sm:$0xff]  ;;  %v40_v1 = vld [vmem:[#allocation5] sm:$0xff] }
  0x1d   :  { %s50_s0 = sshll.u32 %s138_s21, 4  ;;  %v39_v2 = vld [vmem:[#allocation2 + $0x8] sm:$0xff]  ;;  %v41_v3 = vmul.f32 %v40_v1, %v38_v0  ;;  %s51_s0 = int_to_ptr.vmem [resolvable:$true] %s50_s0 }
  0x1e   :  { %v42_v4 = vmul.f32 %v40_v1, %v39_v2  ;;  %s108_s22 = scalar_lea.vmem %s51_s0, 256  ;;  %p113_p11 = scmp.lt.s32.totalorder %s51_s0, %s51_s0 }
  0x1f   :  { %43 = vst [vmem:[#allocation7] sm:$0xff] %v41_v3  ;;  %p109_p10 = scmp.ne.s32.totalorder %s51_s0, %s108_s22  ;;  %p114_p12 = scmp.lt.s32.totalorder %s108_s22, %s108_s22 }
  0x20   :  { %44 = vst [vmem:[#allocation7 + $0x8] sm:$0xff] %v42_v4 }
  0x21   :  { %p115_p13 = por %p114_p12, %p113_p11 }
  0x23   :  { %p116_p0 = pnand %p115_p13, %p109_p10 }
  0x25   :  { %119 = shalt.err (!%p116_p0)
}
  0x26   :  { %56 = dma.vmem_to_hbm [thread:$0]  %s51_s0, 256, %s171_s2, [#allocation4], %s135_s12, %s135_s12, %s136_s13  }
  0x27   :  { %132 = dma.done.wait [#allocation4], 256  }
  0x28   :  { %133 = vsyncadd [#allocation4], 4294967040 }
  0x29   :  { %60 = vsyncpa [#allocation3], 1 }
  0x2a   :  { %61 = vsyncpa [#allocation6], 1 }
  0x2b   :  { %62 = vsyncpa [#allocation4], 1 }

</bundles_post_ra>
